<compile_context>
chip_gen: v5e
topology: v5e:2x2
jax: 0.10.0
libtpu: 0.0.40
codegen_flags: <defaults>
</compile_context>

<pallas_src>
import jax
import jax.numpy as jnp
from jax.experimental import pallas as pl
from jax.experimental.pallas import tpu as pltpu


def mlp_kernel(x_ref, w_ref, b_ref, o_ref):
    # x_ref: (6, TILE_B)   lane-dense input tile (x transposed)
    # w_ref: (10, 6)       folded weights, resident in VMEM
    # b_ref: (10, 1)       folded bias, resident in VMEM (lane broadcast)
    # o_ref: (10, TILE_B)  lane-dense output tile (y transposed)
    o_ref[...] = (
        jnp.dot(w_ref[...], x_ref[...], preferred_element_type=jnp.float32)
        + b_ref[...]
    ).astype(o_ref.dtype)


def fold_params(params):
    """Fold 4 activation-free Linear layers into one affine map.

    Returns (W^T, b^T) in the kernel's lane-dense layout:
      W^T: (10, 6), b^T: (10, 1).
    """
    (w1, b1), (w2, b2), (w3, b3), (w4, b4) = params
    w = w1 @ w2 @ w3 @ w4                                  # (6, 10)
    b = ((b1 @ w2 + b2) @ w3 + b3) @ w4 + b4               # (1, 10)
    return w.T, b.T                                        # (10, 6), (10, 1)


def _round_up(n, m):
    return ((n + m - 1) // m) * m


def mlp_forward(x, folded, tile_b=16384, use_pallas=None):
    """x: (B, 6) float32, folded = fold_params(params). Returns (B, 10) f32."""
    w_t, b_t = folded                      # (10, 6), (10, 1)
    B, in_dim = x.shape
    out_dim = w_t.shape[0]

    if use_pallas is None:
        # Total HBM traffic is only ~64*B bytes; below tens of thousands of
        # rows the fixed pallas_call launch cost dominates -> plain XLA.
        use_pallas = B >= 65536
    if not use_pallas:
        return x @ w_t.T + b_t.T

    # Lane-dense transposed problem: (10, B) = (10, 6) @ (6, B) + (10, 1).
    x_t = x.T                              # layout plumbing only

    tile_b = max(128, _round_up(tile_b, 128))
    if B <= tile_b:
        blk_b = B                          # single block == full array extent
    else:
        blk_b = tile_b                     # multiple of 128; ragged tail masked
    grid = (pl.cdiv(B, blk_b),)

    cost = pl.CostEstimate(
        flops=2 * B * in_dim * out_dim,
        transcendentals=0,
        bytes_accessed=4 * (B * in_dim + in_dim * out_dim + out_dim + B * out_dim),
    )

    y_t = pl.pallas_call(
        mlp_kernel,
        out_shape=jax.ShapeDtypeStruct((out_dim, B), jnp.float32),
        grid_spec=pltpu.PrefetchScalarGridSpec(
            num_scalar_prefetch=0,
            grid=grid,
            in_specs=[
                pl.BlockSpec((in_dim, blk_b), lambda i: (0, i)),    # x^T tile (lane-dense)
                pl.BlockSpec((out_dim, in_dim), lambda i: (0, 0)),  # folded W^T (resident)
                pl.BlockSpec((out_dim, 1), lambda i: (0, 0)),       # folded b (resident)
            ],
            out_specs=pl.BlockSpec((out_dim, blk_b), lambda i: (0, i)),
        ),
        compiler_params=pltpu.CompilerParams(
            dimension_semantics=("parallel",),   # independent batch tiles
        ),
        cost_estimate=cost,
    )(x_t, w_t, b_t)

    return y_t.T


def init_linear(key, in_dim, out_dim):
    # Mimic torch.nn.Linear default init: U(-1/sqrt(in), 1/sqrt(in)).
    kw, kb = jax.random.split(key)
    bound = 1.0 / jnp.sqrt(jnp.float32(in_dim))
    # stored as (in, out) so the math is x @ W (equivalent to torch's x @ W.T)
    w = jax.random.uniform(kw, (in_dim, out_dim), jnp.float32, -bound, bound)
    b = jax.random.uniform(kb, (1, out_dim), jnp.float32, -bound, bound)
    return w, b


def reference(x, params):
    h = x
    for w, b in params:
        h = h @ w + b
    return h


if __name__ == "__main__":
    key = jax.random.PRNGKey(0)
    k_x, k_x2, k_x3, k1, k2, k3, k4 = jax.random.split(key, 7)

    # model dims: 6 -> 15 -> 20 -> 15 -> 10
    params = (
        init_linear(k1, 6, 15),
        init_linear(k2, 15, 20),
        init_linear(k3, 20, 15),
        init_linear(k4, 15, 10),
    )
    folded = fold_params(params)   # hoisted: folded once, reused for every call

    # Small case (module's natural usage), forcing the Pallas path.
    B = 8
    x = jax.random.normal(k_x, (B, 6), jnp.float32)
    y = mlp_forward(x, folded, use_pallas=True)
    jax.block_until_ready(y)
    assert y.shape == (B, 10)
    assert jnp.allclose(y, reference(x, params), atol=1e-4, rtol=1e-3), \
        "mismatch vs reference (small batch)"

    # Single-block case: B not a multiple of 128, one block spanning the array.
    B2 = 60
    x2 = jax.random.normal(k_x2, (B2, 6), jnp.float32)
    y2 = mlp_forward(x2, folded, use_pallas=True)
    jax.block_until_ready(y2)
    assert jnp.allclose(y2, reference(x2, params), atol=1e-4, rtol=1e-3), \
        "mismatch vs reference (single-block batch)"

    # Gridded case with a ragged final block (no pad / no slice in wrapper).
    B3 = 300
    x3 = jax.random.normal(k_x3, (B3, 6), jnp.float32)
    y3 = mlp_forward(x3, folded, tile_b=128, use_pallas=True)
    jax.block_until_ready(y3)
    assert jnp.allclose(y3, reference(x3, params), atol=1e-4, rtol=1e-3), \
        "mismatch vs reference (gridded ragged batch)"

    print("KERNEL_OK")
</pallas_src>

<mosaic_0001>
module attributes {stable_mosaic.version = 11 : i64} {
  func.func @mlp_kernel(%arg0: i32, %arg1: memref<6x8xf32, #tpu.memory_space<vmem>>, %arg2: memref<10x6xf32, #tpu.memory_space<vmem>>, %arg3: memref<10x1xf32, #tpu.memory_space<vmem>>, %arg4: memref<10x8xf32, #tpu.memory_space<vmem>>) attributes {dimension_semantics = [#tpu.dimension_semantics<parallel>], iteration_bounds = array<i64: 1>, scalar_prefetch = 0 : i64, scratch_operands = 0 : i64, tpu.core_type = #tpu.core_type<tc>, window_params = [{transform_indices = @transform_0, window_bounds = array<i64: 6, 8>}, {pipeline_mode = #tpu.pipeline_mode<synchronous>, transform_indices = @transform_1, window_bounds = array<i64: 10, 6>}, {pipeline_mode = #tpu.pipeline_mode<synchronous>, transform_indices = @transform_2, window_bounds = array<i64: 10, 1>}, {transform_indices = @transform_3, window_bounds = array<i64: 10, 8>}]} {
    %c0 = arith.constant 0 : index
    %c0_0 = arith.constant 0 : index
    %0 = vector.load %arg2[%c0, %c0_0] : memref<10x6xf32, #tpu.memory_space<vmem>>, vector<10x6xf32>
    %c0_1 = arith.constant 0 : index
    %c0_2 = arith.constant 0 : index
    %1 = vector.load %arg1[%c0_1, %c0_2] : memref<6x8xf32, #tpu.memory_space<vmem>>, vector<6x8xf32>
    %cst = arith.constant dense<0.000000e+00> : vector<10x8xf32>
    %2 = tpu.matmul %0, %1, %cst {dimension_numbers = #tpu.dot_dimension_numbers<[1], [0], [0], [1], [0, 0, 1, 1], [], []>} : vector<10x6xf32>, vector<6x8xf32>, vector<10x8xf32> -> vector<10x8xf32>
    %c0_3 = arith.constant 0 : index
    %c0_4 = arith.constant 0 : index
    %3 = vector.load %arg3[%c0_3, %c0_4] : memref<10x1xf32, #tpu.memory_space<vmem>>, vector<10x1xf32>
    %4 = vector.broadcast %3 : vector<10x1xf32> to vector<10x8xf32>
    %5 = arith.addf %2, %4 : vector<10x8xf32>
    %c0_5 = arith.constant 0 : index
    %c0_6 = arith.constant 0 : index
    %6 = vector.load %arg4[%c0_5, %c0_6] : memref<10x8xf32, #tpu.memory_space<vmem>>, vector<10x8xf32>
    tpu.vector_store %arg4[%c0_5, %c0_6], %5 {strides = array<i32>} : memref<10x8xf32, #tpu.memory_space<vmem>>, vector<10x8xf32>,
    return
  }
  func.func @transform_0(%arg0: i32) -> (i32, i32) {
    %c0_i32 = arith.constant 0 : i32
    %c0_i32_0 = arith.constant 0 : i32
    return %c0_i32, %arg0 : i32, i32
  }
  func.func @transform_1(%arg0: i32) -> (i32, i32) {
    %c0_i32 = arith.constant 0 : i32
    %c0_i32_0 = arith.constant 0 : i32
    %c0_i32_1 = arith.constant 0 : i32
    return %c0_i32, %c0_i32_0 : i32, i32
  }
  func.func @transform_2(%arg0: i32) -> (i32, i32) {
    %c0_i32 = arith.constant 0 : i32
    %c0_i32_0 = arith.constant 0 : i32
    %c0_i32_1 = arith.constant 0 : i32
    return %c0_i32, %c0_i32_0 : i32, i32
  }
  func.func @transform_3(%arg0: i32) -> (i32, i32) {
    %c0_i32 = arith.constant 0 : i32
    %c0_i32_0 = arith.constant 0 : i32
    return %c0_i32, %arg0 : i32, i32
  }
}

</mosaic_0001>

<bundles_post_ra>
// kernel: tpu_custom_call.1
= control target key start
LH: loop header
LB: loop body
LE: loop exit
PB: predicated region body
PF: predicated region fallthrough
CT: control target
= control target key end

     0   :  { %vm36_vm0 = vcmask 1045504   ;;  %vm29_vm1 = vcmask 48128   ;;  %v77_v0 = vmov 0   ;;  %vm63_vm2 = vcmask 64512   ;;  %s119_s2 = inlined_call_operand.vmem [shape: f32[10,1], index: 2, kind: input, shape index: {}]   ;;  %s120_s0 = inlined_call_operand.vmem [shape: f32[6,8], index: 0, kind: input, shape index: {}]   ;;  %s121_s1 = inlined_call_operand.vmem [shape: f32[10,6], index: 1, kind: input, shape index: {}]   ;;  %s122_s3 = inlined_call_operand.vmem [shape: f32[10,8], index: 3, kind: output, shape index: {}]  }
   0x1   :  { %76 = vset.pattern.permute.xlu0 %v77_v0  ;;  %v17_v1 = vld [vmem:[%s119_s2] sm:$0xff]  ;;  %v15_v4 = vld [vmem:[%s121_s1 + $0x8] sm:$0x3]  ;;  %vm65_vm3 = vcmask 58368  }
   0x2   :  { %v16_v2 = vld [vmem:[%s120_s0] sm:$0x3f]  ;;  %21 = vperm.xlu0 %76, %v17_v1   ;;  %v18_v5 = vld [vmem:[%s119_s2 + $0x8] sm:$0x3] }
   0x3   :  { %v14_v3 = vld [vmem:[%s121_s1] sm:$0xff]  ;;  %71 = vmatpush.msk.msra.mxu0 %vm36_vm0, %v16_v2  ;;  %74 = vmatpush.msk.msra.mxu1 %vm36_vm0, %v16_v2 }
   0x4   :  { %72 = vmatmul.msk.f32.vlgmr.msra.gmra.mxu0 %vm29_vm1, %v14_v3  ;;  %73 = vmatmul.msk.f32.vlgmr.msra.gmra.mxu1 %vm29_vm1, %v15_v4 }
   0xa   :  { %26 = vperm.xlu0 %76, %v18_v5  }
  0x74   :  { %v22_v6 = vpop.permute.xlu0 %21 }
  0x7c   :  { %v27_v8 = vpop.permute.xlu0 %26 }
  0x81   :  { %v57_v7 = vpop.f32.mrf.mxu0  ;;  %v60_v10 = vpop.f32.mrf.mxu1 }
  0x82   :  { %v58_v9 = vadd.f32 %v57_v7, %v22_v6  ;;  %v61_v11 = vadd.f32 %v60_v10, %v27_v8 }
  0x84   :  { %64 = vst.msk [vmem:[%s122_s3] sm:$0xff] %vm63_vm2, %v58_v9 }
  0x85   :  { %66 = vst.msk [vmem:[%s122_s3 + $0x8] sm:$0x3] %vm65_vm3, %v61_v11 }

</bundles_post_ra>
